<compile_context>
chip_gen: v7x
topology: tpu7x:2x2x1
jax: 0.10.0
libtpu: 0.0.40
codegen_flags: <defaults>
</compile_context>

<pallas_src>
import functools

import jax
import jax.numpy as jnp
from jax.experimental import pallas as pl
from jax.experimental.pallas import tpu as pltpu


def _round_up(v, m):
    return (v + m - 1) // m * m


def _knn_kernel(x_ref, x2_ref, data_ref, d2_ref, lbl_ref, out_ref,
                pool_d2_ref, pool_cls_ref, *, K, C_pad, SCALE):
    n = pl.program_id(1)
    num_n = pl.num_programs(1)

    Bt = x_ref.shape[0]
    Nt = lbl_ref.shape[1]
    T = pool_d2_ref.shape[1]          # KPAD + Nt
    KPAD = T - Nt                     # 128 lanes reserved for the running K-best

    # Reset the running K-best at the start of every N sweep.
    @pl.when(n == 0)
    def _():
        pool_d2_ref[:, :KPAD] = jnp.full((Bt, KPAD), jnp.inf, jnp.float32)
        pool_cls_ref[:, :KPAD] = jnp.zeros((Bt, KPAD), jnp.int32)

    # Squared Euclidean distances for this (B tile, N tile):
    #   ||x||^2 - 2 x.d + ||d||^2   (norms precomputed outside the kernel).
    cross = jax.lax.dot_general(
        x_ref[...], data_ref[...], (((1,), (1,)), ((), ())),
        preferred_element_type=jnp.float32)                           # (Bt, Nt)
    tile_d2 = jnp.maximum(x2_ref[...] - 2.0 * cross + d2_ref[...], 0.0)

    # Candidate pool = running K-best (first KPAD lanes) ++ current tile.
    pool_d2_ref[:, KPAD:] = tile_d2
    pool_cls_ref[:, KPAD:] = jnp.broadcast_to(lbl_ref[...], (Bt, Nt))

    pool_d2 = pool_d2_ref[...]                                        # (Bt, T)
    col_ids = jax.lax.broadcasted_iota(jnp.int32, (Bt, T), 1)
    packed = col_ids * SCALE + pool_cls_ref[...]   # unique per column, carries class
    BIG = jnp.int32(jnp.iinfo(jnp.int32).max)
    lane_k = jax.lax.broadcasted_iota(jnp.int32, (Bt, KPAD), 1)

    # Iteratively extract the K smallest candidates (2 cross-lane reduces each);
    # tie-break is lowest pool column, which preserves first-occurrence order.
    def body(k, carry):
        d2_work, nb_d2, nb_cls = carry
        cur = jnp.min(d2_work, axis=-1, keepdims=True)                # (Bt, 1)
        is_min = d2_work == cur
        pmin = jnp.min(jnp.where(is_min, packed, BIG), axis=-1, keepdims=True)
        sel_cls = jnp.bitwise_and(pmin, SCALE - 1)                    # (Bt, 1)
        write = lane_k == k
        nb_d2 = jnp.where(write, cur, nb_d2)
        nb_cls = jnp.where(write, sel_cls, nb_cls)
        d2_work = jnp.where(packed == pmin, jnp.inf, d2_work)         # drop selected
        return d2_work, nb_d2, nb_cls

    init = (pool_d2,
            jnp.full((Bt, KPAD), jnp.inf, jnp.float32),
            jnp.zeros((Bt, KPAD), jnp.int32))
    _, nb_d2, nb_cls = jax.lax.fori_loop(0, K, body, init, unroll=True)
    pool_d2_ref[:, :KPAD] = nb_d2
    pool_cls_ref[:, :KPAD] = nb_cls

    # Finalize: distance-weighted vote + argmax + one-hot (lane-dense C_pad).
    @pl.when(n == num_n - 1)
    def _():
        bd = jnp.sqrt(pool_d2_ref[:, :KPAD])       # pad lanes = +inf -> weight 0
        bcls = pool_cls_ref[:, :KPAD]
        w_inv = 1.0 / jnp.maximum(bd, 1e-30)
        w_zero = (bd == 0.0).astype(jnp.float32)
        any_zero = jnp.max(w_zero, axis=-1, keepdims=True)
        # sklearn weights='distance': if any neighbor is at distance 0, only those vote.
        w = jnp.where(any_zero > 0.0, w_zero, w_inv)                  # (Bt, KPAD)

        cls_ids = jax.lax.broadcasted_iota(jnp.int32, (Bt, C_pad), 1)
        votes = jnp.zeros((Bt, C_pad), jnp.float32)
        for k in range(K):                                            # tiny finalize loop
            lane_is_k = lane_k == k
            w_k = jnp.sum(jnp.where(lane_is_k, w, 0.0), axis=-1, keepdims=True)
            c_k = jnp.sum(jnp.where(lane_is_k, bcls, 0), axis=-1, keepdims=True)
            votes = votes + w_k * (cls_ids == c_k).astype(jnp.float32)

        vmax = jnp.max(votes, axis=-1, keepdims=True)
        first = jnp.min(jnp.where(votes == vmax, cls_ids, C_pad),
                        axis=-1, keepdims=True)
        out_ref[...] = (cls_ids == first).astype(jnp.float32)


def knn_predict_onehot(x, data, labels, size_out, K=5, *, b_tile=128, n_tile=512):
    """Pallas forward of the 'initiated' KNN branch.

    x:      (B, size_in)  float32 queries
    data:   (N, size_in)  float32 fitted training points
    labels: (N,)          class ids of the fitted points
    returns (B, size_out) float32 one-hot predictions
    """
    x = jnp.asarray(x, jnp.float32)
    data = jnp.asarray(data, jnp.float32)
    B, D = x.shape
    N = data.shape[0]
    assert 1 <= K <= 128, "streaming K-best keeps at most 128 lanes"

    C_pad = _round_up(max(size_out, 1), 128)           # lane-dense votes / output
    SCALE = 1 << (C_pad - 1).bit_length()              # pow2 >= C_pad (cheap unpack)

    Bt = min(b_tile, _round_up(B, 8))
    B_pad = _round_up(B, Bt)
    Nt = min(n_tile, _round_up(N, 128))
    N_pad = _round_up(N, Nt)

    # Precompute the norms once (outside the kernel), lane-dense along N.
    x2 = jnp.sum(x * x, axis=-1, keepdims=True)        # (B, 1)
    d2 = jnp.sum(data * data, axis=-1)                 # (N,)

    # Pad: fake stored points get +inf squared norm -> +inf distance, never picked.
    xp = jnp.zeros((B_pad, D), jnp.float32).at[:B].set(x)
    x2p = jnp.zeros((B_pad, 1), jnp.float32).at[:B].set(x2)
    dp = jnp.zeros((N_pad, D), jnp.float32).at[:N].set(data)
    d2p = jnp.full((1, N_pad), jnp.inf, jnp.float32).at[0, :N].set(d2)
    lp = jnp.zeros((1, N_pad), jnp.int32).at[0, :N].set(
        jnp.asarray(labels).astype(jnp.int32))

    kernel = functools.partial(_knn_kernel, K=K, C_pad=C_pad, SCALE=SCALE)
    grid = (B_pad // Bt, N_pad // Nt)

    out = pl.pallas_call(
        kernel,
        grid=grid,
        out_shape=jax.ShapeDtypeStruct((B_pad, C_pad), jnp.float32),
        in_specs=[
            pl.BlockSpec((Bt, D), lambda b, n: (b, 0)),      # x tile
            pl.BlockSpec((Bt, 1), lambda b, n: (b, 0)),      # ||x||^2
            pl.BlockSpec((Nt, D), lambda b, n: (n, 0)),      # data tile (streamed)
            pl.BlockSpec((1, Nt), lambda b, n: (0, n)),      # ||data||^2 (streamed)
            pl.BlockSpec((1, Nt), lambda b, n: (0, n)),      # labels     (streamed)
        ],
        out_specs=pl.BlockSpec((Bt, C_pad), lambda b, n: (b, 0)),
        scratch_shapes=[
            pltpu.VMEM((Bt, 128 + Nt), jnp.float32),         # pool: K-best ++ tile d2
            pltpu.VMEM((Bt, 128 + Nt), jnp.int32),           # pool: class ids
        ],
        compiler_params=pltpu.CompilerParams(
            dimension_semantics=("parallel", "arbitrary")),
    )(xp, x2p, dp, d2p, lp)
    return out[:B, :size_out]


class KNNModule:
    """JAX mirror of the PyTorch KNN output layer (forward only)."""

    def __init__(self, size_in, size_out, K=5):
        self.size_in = size_in
        self.size_out = size_out
        self.K = K
        self.initiated = False
        self.data = jnp.zeros((0, size_in), jnp.float32)
        self.labels = jnp.zeros((0,), jnp.float32)

    def fit(self, data, labels):
        # mirrors update(): store fitted data, mark initiated
        self.data = jnp.asarray(data, jnp.float32)
        self.labels = jnp.asarray(labels)
        self.initiated = True

    def forward(self, x, key=None):
        if self.initiated:
            return knn_predict_onehot(x, self.data, self.labels,
                                      self.size_out, K=self.K)
        # un-initiated branch: torch.randn equivalent (plain JAX glue)
        if key is None:
            key = jax.random.PRNGKey(0)
        return jax.random.normal(key, (x.shape[0], self.size_out), jnp.float32)


def _reference(x, data, labels, K, C):
    """Pure-JAX reference of sklearn brute KNN (weights='distance') + eye lookup."""
    dist = jnp.sqrt(jnp.maximum(
        jnp.sum(x * x, -1, keepdims=True)
        - 2.0 * x @ data.T
        + jnp.sum(data * data, -1)[None, :], 0.0))
    neg_topk, idx = jax.lax.top_k(-dist, K)
    nd = -neg_topk                                    # (B, K) neighbor distances
    nl = labels[idx].astype(jnp.int32)                # (B, K) neighbor labels
    any_zero = jnp.any(nd == 0.0, axis=-1, keepdims=True)
    w = jnp.where(any_zero, (nd == 0.0).astype(jnp.float32),
                  1.0 / jnp.maximum(nd, 1e-30))
    votes = jnp.sum(w[..., None] * jax.nn.one_hot(nl, C), axis=1)
    cls = jnp.argmax(votes, axis=-1)
    return jnp.eye(C, dtype=jnp.float32)[cls]


def _make_problem(key, B, D, C, N):
    k_data, k_x = jax.random.split(key)
    labels = (jnp.arange(N) % C).astype(jnp.float32)
    centers = jnp.eye(C, D, dtype=jnp.float32) * 3.0
    data = centers[(jnp.arange(N) % C)] + 0.5 * jax.random.normal(k_data, (N, D))
    x = centers[(jnp.arange(B) % C)] + 0.5 * jax.random.normal(k_x, (B, D))
    return x.astype(jnp.float32), data.astype(jnp.float32), labels


if __name__ == "__main__":
    key = jax.random.PRNGKey(0)
    k1, k2 = jax.random.split(key)

    # --- test 1: small shapes, single N tile --------------------------------
    B, D, C, N, K = 8, 32, 4, 64, 5
    x, data, labels = _make_problem(k1, B, D, C, N)
    knn = KNNModule(size_in=D, size_out=C, K=K)
    knn.fit(data, labels)                       # "update(): neigh.fit(...)"
    out = jax.block_until_ready(knn.forward(x))   # Pallas path ("initiated")
    ref = _reference(x, data, labels, K, C)
    assert out.shape == (B, C) and out.dtype == jnp.float32
    assert bool(jnp.all(out == ref)), "Pallas KNN mismatch vs reference (test 1)"

    # --- test 2: multiple streamed N tiles (exercises the K-best merge) -----
    B2, N2 = 16, 320
    x2, data2, labels2 = _make_problem(k2, B2, D, C, N2)
    out2 = knn_predict_onehot(x2, data2, labels2, C, K=K, n_tile=128)
    out2 = jax.block_until_ready(out2)
    ref2 = _reference(x2, data2, labels2, K, C)
    assert bool(jnp.all(out2 == ref2)), "Pallas KNN mismatch vs reference (test 2)"

    # also exercise the un-initiated branch (plain JAX randn, no kernel)
    knn2 = KNNModule(size_in=D, size_out=C, K=K)
    _ = jax.block_until_ready(knn2.forward(x, key=jax.random.PRNGKey(1)))

    print("KERNEL_OK")
</pallas_src>

<mosaic_0001>
module attributes {stable_mosaic.version = 11 : i64} {
  func.func @_knn_kernel(%arg0: i32, %arg1: i32, %arg2: memref<8x32xf32, #tpu.memory_space<vmem>>, %arg3: memref<8x1xf32, #tpu.memory_space<vmem>>, %arg4: memref<128x32xf32, #tpu.memory_space<vmem>>, %arg5: memref<1x128xf32, #tpu.memory_space<vmem>>, %arg6: memref<1x128xi32, #tpu.memory_space<vmem>>, %arg7: memref<8x128xf32, #tpu.memory_space<vmem>>, %arg8: memref<8x256xf32, #tpu.memory_space<vmem>>, %arg9: memref<8x256xi32, #tpu.memory_space<vmem>>) attributes {dimension_semantics = [#tpu.dimension_semantics<parallel>, #tpu.dimension_semantics<arbitrary>], iteration_bounds = array<i64: 1, 1>, scalar_prefetch = 0 : i64, scratch_operands = 2 : i64, tpu.core_type = #tpu.core_type<tc>, window_params = [{transform_indices = @transform_0, window_bounds = array<i64: 8, 32>}, {transform_indices = @transform_1, window_bounds = array<i64: 8, 1>}, {transform_indices = @transform_2, window_bounds = array<i64: 128, 32>}, {transform_indices = @transform_3, window_bounds = array<i64: 1, 128>}, {transform_indices = @transform_4, window_bounds = array<i64: 1, 128>}, {transform_indices = @transform_5, window_bounds = array<i64: 8, 128>}]} {
    %c0_i32 = arith.constant 0 : i32
    %0 = arith.cmpi eq, %arg1, %c0_i32 : i32
    %1 = arith.extui %0 : i1 to i32
    %c0_i32_0 = arith.constant 0 : i32
    %2 = arith.cmpi ne, %1, %c0_i32_0 : i32
    scf.if %2 {
      %cst_47 = arith.constant 0x7F800000 : f32
      %145 = vector.broadcast %cst_47 : f32 to vector<8x128xf32>
      %c0_48 = arith.constant 0 : index
      %c0_49 = arith.constant 0 : index
      %146 = vector.load %arg8[%c0_48, %c0_49] : memref<8x256xf32, #tpu.memory_space<vmem>>, vector<8x128xf32>
      tpu.vector_store %arg8[%c0_48, %c0_49], %145 {strides = array<i32>} : memref<8x256xf32, #tpu.memory_space<vmem>>, vector<8x128xf32>,
      %c0_i32_50 = arith.constant 0 : i32
      %147 = vector.broadcast %c0_i32_50 : i32 to vector<8x128xi32>
      %c0_51 = arith.constant 0 : index
      %c0_52 = arith.constant 0 : index
      %148 = vector.load %arg9[%c0_51, %c0_52] : memref<8x256xi32, #tpu.memory_space<vmem>>, vector<8x128xi32>
      tpu.vector_store %arg9[%c0_51, %c0_52], %147 {strides = array<i32>} : memref<8x256xi32, #tpu.memory_space<vmem>>, vector<8x128xi32>,
    } else {
    }
    %c0 = arith.constant 0 : index
    %c0_1 = arith.constant 0 : index
    %3 = vector.load %arg2[%c0, %c0_1] : memref<8x32xf32, #tpu.memory_space<vmem>>, vector<8x32xf32>
    %c0_2 = arith.constant 0 : index
    %c0_3 = arith.constant 0 : index
    %4 = vector.load %arg4[%c0_2, %c0_3] : memref<128x32xf32, #tpu.memory_space<vmem>>, vector<128x32xf32>
    %cst = arith.constant dense<0.000000e+00> : vector<8x128xf32>
    %5 = tpu.matmul %3, %4, %cst {dimension_numbers = #tpu.dot_dimension_numbers<[1], [1], [0], [0], [0, 0, 1, 0], [], []>} : vector<8x32xf32>, vector<128x32xf32>, vector<8x128xf32> -> vector<8x128xf32>
    %c0_4 = arith.constant 0 : index
    %c0_5 = arith.constant 0 : index
    %6 = vector.load %arg3[%c0_4, %c0_5] : memref<8x1xf32, #tpu.memory_space<vmem>>, vector<8x1xf32>
    %cst_6 = arith.constant 2.000000e+00 : f32
    %7 = vector.broadcast %cst_6 : f32 to vector<8x128xf32>
    %8 = arith.mulf %7, %5 : vector<8x128xf32>
    %9 = vector.broadcast %6 : vector<8x1xf32> to vector<8x128xf32>
    %10 = arith.subf %9, %8 : vector<8x128xf32>
    %c0_7 = arith.constant 0 : index
    %c0_8 = arith.constant 0 : index
    %11 = vector.load %arg5[%c0_7, %c0_8] : memref<1x128xf32, #tpu.memory_space<vmem>>, vector<1x128xf32>
    %12 = vector.broadcast %11 : vector<1x128xf32> to vector<8x128xf32>
    %13 = arith.addf %10, %12 : vector<8x128xf32>
    %cst_9 = arith.constant 0.000000e+00 : f32
    %14 = vector.broadcast %cst_9 : f32 to vector<8x128xf32>
    %15 = arith.maximumf %13, %14 : vector<8x128xf32>
    %c0_10 = arith.constant 0 : index
    %c128 = arith.constant 128 : index
    %16 = vector.load %arg8[%c0_10, %c128] : memref<8x256xf32, #tpu.memory_space<vmem>>, vector<8x128xf32>
    tpu.vector_store %arg8[%c0_10, %c128], %15 {strides = array<i32>} : memref<8x256xf32, #tpu.memory_space<vmem>>, vector<8x128xf32>,
    %c0_11 = arith.constant 0 : index
    %c0_12 = arith.constant 0 : index
    %17 = vector.load %arg6[%c0_11, %c0_12] : memref<1x128xi32, #tpu.memory_space<vmem>>, vector<1x128xi32>
    %18 = vector.shape_cast %17 : vector<1x128xi32> to vector<1x128xi32>
    %19 = vector.broadcast %18 : vector<1x128xi32> to vector<8x128xi32>
    %c0_13 = arith.constant 0 : index
    %c128_14 = arith.constant 128 : index
    %20 = vector.load %arg9[%c0_13, %c128_14] : memref<8x256xi32, #tpu.memory_space<vmem>>, vector<8x128xi32>
    tpu.vector_store %arg9[%c0_13, %c128_14], %19 {strides = array<i32>} : memref<8x256xi32, #tpu.memory_space<vmem>>, vector<8x128xi32>,
    %c0_15 = arith.constant 0 : index
    %c0_16 = arith.constant 0 : index
    %21 = vector.load %arg8[%c0_15, %c0_16] : memref<8x256xf32, #tpu.memory_space<vmem>>, vector<8x256xf32>
    %22 = tpu.iota {dimensions = array<i32: 1>} : vector<8x256xi32>
    %c128_i32 = arith.constant 128 : i32
    %23 = vector.broadcast %c128_i32 : i32 to vector<8x256xi32>
    %24 = arith.muli %22, %23 : vector<8x256xi32>
    %c0_17 = arith.constant 0 : index
    %c0_18 = arith.constant 0 : index
    %25 = vector.load %arg9[%c0_17, %c0_18] : memref<8x256xi32, #tpu.memory_space<vmem>>, vector<8x256xi32>
    %26 = arith.addi %24, %25 : vector<8x256xi32>
    %27 = tpu.iota {dimensions = array<i32: 1>} : vector<8x128xi32>
    %cst_19 = arith.constant 0x7F800000 : f32
    %28 = vector.broadcast %cst_19 : f32 to vector<8x128xf32>
    %c0_i32_20 = arith.constant 0 : i32
    %29 = vector.broadcast %c0_i32_20 : i32 to vector<8x128xi32>
    %c2147483647_i32 = arith.constant 2147483647 : i32
    %c0_i32_21 = arith.constant 0 : i32
    %cst_22 = arith.constant dense<0x7F800000> : vector<8xf32>
    %30 = vector.multi_reduction <minimumf>, %21, %cst_22 [1] : vector<8x256xf32> to vector<8xf32>
    %31 = vector.shape_cast %30 : vector<8xf32> to vector<8x1xf32>
    %32 = vector.broadcast %31 : vector<8x1xf32> to vector<8x256xf32>
    %33 = arith.cmpf oeq, %21, %32 : vector<8x256xf32>
    %34 = vector.broadcast %c2147483647_i32 : i32 to vector<8x256xi32>
    %35 = arith.select %33, %26, %34 : vector<8x256xi1>, vector<8x256xi32>
    %cst_23 = arith.constant dense<2147483647> : vector<8xi32>
    %36 = vector.multi_reduction <minsi>, %35, %cst_23 [1] : vector<8x256xi32> to vector<8xi32>
    %37 = vector.shape_cast %36 : vector<8xi32> to vector<8x1xi32>
    %c127_i32 = arith.constant 127 : i32
    %38 = vector.broadcast %c127_i32 : i32 to vector<8x1xi32>
    %39 = arith.andi %37, %38 : vector<8x1xi32>
    %40 = vector.broadcast %c0_i32_21 : i32 to vector<8x128xi32>
    %41 = arith.cmpi eq, %27, %40 : vector<8x128xi32>
    %42 = vector.shape_cast %31 : vector<8x1xf32> to vector<8x1xf32>
    %43 = vector.broadcast %42 : vector<8x1xf32> to vector<8x128xf32>
    %44 = arith.select %41, %43, %28 : vector<8x128xi1>, vector<8x128xf32>
    %45 = vector.shape_cast %39 : vector<8x1xi32> to vector<8x1xi32>
    %46 = vector.broadcast %45 : vector<8x1xi32> to vector<8x128xi32>
    %47 = arith.select %41, %46, %29 : vector<8x128xi1>, vector<8x128xi32>
    %48 = vector.broadcast %37 : vector<8x1xi32> to vector<8x256xi32>
    %49 = arith.cmpi eq, %26, %48 : vector<8x256xi32>
    %cst_24 = arith.constant 0x7F800000 : f32
    %50 = vector.broadcast %cst_24 : f32 to vector<8x256xf32>
    %51 = arith.select %49, %50, %21 : vector<8x256xi1>, vector<8x256xf32>
    %c1_i32 = arith.constant 1 : i32
    %cst_25 = arith.constant dense<0x7F800000> : vector<8xf32>
    %52 = vector.multi_reduction <minimumf>, %51, %cst_25 [1] : vector<8x256xf32> to vector<8xf32>
    %53 = vector.shape_cast %52 : vector<8xf32> to vector<8x1xf32>
    %54 = vector.broadcast %53 : vector<8x1xf32> to vector<8x256xf32>
    %55 = arith.cmpf oeq, %51, %54 : vector<8x256xf32>
    %56 = vector.broadcast %c2147483647_i32 : i32 to vector<8x256xi32>
    %57 = arith.select %55, %26, %56 : vector<8x256xi1>, vector<8x256xi32>
    %cst_26 = arith.constant dense<2147483647> : vector<8xi32>
    %58 = vector.multi_reduction <minsi>, %57, %cst_26 [1] : vector<8x256xi32> to vector<8xi32>
    %59 = vector.shape_cast %58 : vector<8xi32> to vector<8x1xi32>
    %c127_i32_27 = arith.constant 127 : i32
    %60 = vector.broadcast %c127_i32_27 : i32 to vector<8x1xi32>
    %61 = arith.andi %59, %60 : vector<8x1xi32>
    %62 = vector.broadcast %c1_i32 : i32 to vector<8x128xi32>
    %63 = arith.cmpi eq, %27, %62 : vector<8x128xi32>
    %64 = vector.shape_cast %53 : vector<8x1xf32> to vector<8x1xf32>
    %65 = vector.broadcast %64 : vector<8x1xf32> to vector<8x128xf32>
    %66 = arith.select %63, %65, %44 : vector<8x128xi1>, vector<8x128xf32>
    %67 = vector.shape_cast %61 : vector<8x1xi32> to vector<8x1xi32>
    %68 = vector.broadcast %67 : vector<8x1xi32> to vector<8x128xi32>
    %69 = arith.select %63, %68, %47 : vector<8x128xi1>, vector<8x128xi32>
    %70 = vector.broadcast %59 : vector<8x1xi32> to vector<8x256xi32>
    %71 = arith.cmpi eq, %26, %70 : vector<8x256xi32>
    %cst_28 = arith.constant 0x7F800000 : f32
    %72 = vector.broadcast %cst_28 : f32 to vector<8x256xf32>
    %73 = arith.select %71, %72, %51 : vector<8x256xi1>, vector<8x256xf32>
    %c2_i32 = arith.constant 2 : i32
    %cst_29 = arith.constant dense<0x7F800000> : vector<8xf32>
    %74 = vector.multi_reduction <minimumf>, %73, %cst_29 [1] : vector<8x256xf32> to vector<8xf32>
    %75 = vector.shape_cast %74 : vector<8xf32> to vector<8x1xf32>
    %76 = vector.broadcast %75 : vector<8x1xf32> to vector<8x256xf32>
    %77 = arith.cmpf oeq, %73, %76 : vector<8x256xf32>
    %78 = vector.broadcast %c2147483647_i32 : i32 to vector<8x256xi32>
    %79 = arith.select %77, %26, %78 : vector<8x256xi1>, vector<8x256xi32>
    %cst_30 = arith.constant dense<2147483647> : vector<8xi32>
    %80 = vector.multi_reduction <minsi>, %79, %cst_30 [1] : vector<8x256xi32> to vector<8xi32>
    %81 = vector.shape_cast %80 : vector<8xi32> to vector<8x1xi32>
    %c127_i32_31 = arith.constant 127 : i32
    %82 = vector.broadcast %c127_i32_31 : i32 to vector<8x1xi32>
    %83 = arith.andi %81, %82 : vector<8x1xi32>
    %84 = vector.broadcast %c2_i32 : i32 to vector<8x128xi32>
    %85 = arith.cmpi eq, %27, %84 : vector<8x128xi32>
    %86 = vector.shape_cast %75 : vector<8x1xf32> to vector<8x1xf32>
    %87 = vector.broadcast %86 : vector<8x1xf32> to vector<8x128xf32>
    %88 = arith.select %85, %87, %66 : vector<8x128xi1>, vector<8x128xf32>
    %89 = vector.shape_cast %83 : vector<8x1xi32> to vector<8x1xi32>
    %90 = vector.broadcast %89 : vector<8x1xi32> to vector<8x128xi32>
    %91 = arith.select %85, %90, %69 : vector<8x128xi1>, vector<8x128xi32>
    %92 = vector.broadcast %81 : vector<8x1xi32> to vector<8x256xi32>
    %93 = arith.cmpi eq, %26, %92 : vector<8x256xi32>
    %cst_32 = arith.constant 0x7F800000 : f32
    %94 = vector.broadcast %cst_32 : f32 to vector<8x256xf32>
    %95 = arith.select %93, %94, %73 : vector<8x256xi1>, vector<8x256xf32>
    %c3_i32 = arith.constant 3 : i32
    %cst_33 = arith.constant dense<0x7F800000> : vector<8xf32>
    %96 = vector.multi_reduction <minimumf>, %95, %cst_33 [1] : vector<8x256xf32> to vector<8xf32>
    %97 = vector.shape_cast %96 : vector<8xf32> to vector<8x1xf32>
    %98 = vector.broadcast %97 : vector<8x1xf32> to vector<8x256xf32>
    %99 = arith.cmpf oeq, %95, %98 : vector<8x256xf32>
    %100 = vector.broadcast %c2147483647_i32 : i32 to vector<8x256xi32>
    %101 = arith.select %99, %26, %100 : vector<8x256xi1>, vector<8x256xi32>
    %cst_34 = arith.constant dense<2147483647> : vector<8xi32>
    %102 = vector.multi_reduction <minsi>, %101, %cst_34 [1] : vector<8x256xi32> to vector<8xi32>
    %103 = vector.shape_cast %102 : vector<8xi32> to vector<8x1xi32>
    %c127_i32_35 = arith.constant 127 : i32
    %104 = vector.broadcast %c127_i32_35 : i32 to vector<8x1xi32>
    %105 = arith.andi %103, %104 : vector<8x1xi32>
    %106 = vector.broadcast %c3_i32 : i32 to vector<8x128xi32>
    %107 = arith.cmpi eq, %27, %106 : vector<8x128xi32>
    %108 = vector.shape_cast %97 : vector<8x1xf32> to vector<8x1xf32>
    %109 = vector.broadcast %108 : vector<8x1xf32> to vector<8x128xf32>
    %110 = arith.select %107, %109, %88 : vector<8x128xi1>, vector<8x128xf32>
    %111 = vector.shape_cast %105 : vector<8x1xi32> to vector<8x1xi32>
    %112 = vector.broadcast %111 : vector<8x1xi32> to vector<8x128xi32>
    %113 = arith.select %107, %112, %91 : vector<8x128xi1>, vector<8x128xi32>
    %114 = vector.broadcast %103 : vector<8x1xi32> to vector<8x256xi32>
    %115 = arith.cmpi eq, %26, %114 : vector<8x256xi32>
    %cst_36 = arith.constant 0x7F800000 : f32
    %116 = vector.broadcast %cst_36 : f32 to vector<8x256xf32>
    %117 = arith.select %115, %116, %95 : vector<8x256xi1>, vector<8x256xf32>
    %c4_i32 = arith.constant 4 : i32
    %cst_37 = arith.constant dense<0x7F800000> : vector<8xf32>
    %118 = vector.multi_reduction <minimumf>, %117, %cst_37 [1] : vector<8x256xf32> to vector<8xf32>
    %119 = vector.shape_cast %118 : vector<8xf32> to vector<8x1xf32>
    %120 = vector.broadcast %119 : vector<8x1xf32> to vector<8x256xf32>
    %121 = arith.cmpf oeq, %117, %120 : vector<8x256xf32>
    %122 = vector.broadcast %c2147483647_i32 : i32 to vector<8x256xi32>
    %123 = arith.select %121, %26, %122 : vector<8x256xi1>, vector<8x256xi32>
    %cst_38 = arith.constant dense<2147483647> : vector<8xi32>
    %124 = vector.multi_reduction <minsi>, %123, %cst_38 [1] : vector<8x256xi32> to vector<8xi32>
    %125 = vector.shape_cast %124 : vector<8xi32> to vector<8x1xi32>
    %c127_i32_39 = arith.constant 127 : i32
    %126 = vector.broadcast %c127_i32_39 : i32 to vector<8x1xi32>
    %127 = arith.andi %125, %126 : vector<8x1xi32>
    %128 = vector.broadcast %c4_i32 : i32 to vector<8x128xi32>
    %129 = arith.cmpi eq, %27, %128 : vector<8x128xi32>
    %130 = vector.shape_cast %119 : vector<8x1xf32> to vector<8x1xf32>
    %131 = vector.broadcast %130 : vector<8x1xf32> to vector<8x128xf32>
    %132 = arith.select %129, %131, %110 : vector<8x128xi1>, vector<8x128xf32>
    %133 = vector.shape_cast %127 : vector<8x1xi32> to vector<8x1xi32>
    %134 = vector.broadcast %133 : vector<8x1xi32> to vector<8x128xi32>
    %135 = arith.select %129, %134, %113 : vector<8x128xi1>, vector<8x128xi32>
    %136 = vector.broadcast %125 : vector<8x1xi32> to vector<8x256xi32>
    %137 = arith.cmpi eq, %26, %136 : vector<8x256xi32>
    %cst_40 = arith.constant 0x7F800000 : f32
    %138 = vector.broadcast %cst_40 : f32 to vector<8x256xf32>
    %139 = arith.select %137, %138, %117 : vector<8x256xi1>, vector<8x256xf32>
    %c5_i32 = arith.constant 5 : i32
    %c0_41 = arith.constant 0 : index
    %c0_42 = arith.constant 0 : index
    %140 = vector.load %arg8[%c0_41, %c0_42] : memref<8x256xf32, #tpu.memory_space<vmem>>, vector<8x128xf32>
    tpu.vector_store %arg8[%c0_41, %c0_42], %132 {strides = array<i32>} : memref<8x256xf32, #tpu.memory_space<vmem>>, vector<8x128xf32>,
    %c0_43 = arith.constant 0 : index
    %c0_44 = arith.constant 0 : index
    %141 = vector.load %arg9[%c0_43, %c0_44] : memref<8x256xi32, #tpu.memory_space<vmem>>, vector<8x128xi32>
    tpu.vector_store %arg9[%c0_43, %c0_44], %135 {strides = array<i32>} : memref<8x256xi32, #tpu.memory_space<vmem>>, vector<8x128xi32>,
    %c0_i32_45 = arith.constant 0 : i32
    %142 = arith.cmpi eq, %arg1, %c0_i32_45 : i32
    %143 = arith.extui %142 : i1 to i32
    %c0_i32_46 = arith.constant 0 : i32
    %144 = arith.cmpi ne, %143, %c0_i32_46 : i32
    scf.if %144 {
      %c0_47 = arith.constant 0 : index
      %c0_48 = arith.constant 0 : index
      %145 = vector.load %arg8[%c0_47, %c0_48] : memref<8x256xf32, #tpu.memory_space<vmem>>, vector<8x128xf32>
      %146 = math.sqrt %145 : vector<8x128xf32>
      %c0_49 = arith.constant 0 : index
      %c0_50 = arith.constant 0 : index
      %147 = vector.load %arg9[%c0_49, %c0_50] : memref<8x256xi32, #tpu.memory_space<vmem>>, vector<8x128xi32>
      %cst_51 = arith.constant 1.000000e-30 : f32
      %148 = vector.broadcast %cst_51 : f32 to vector<8x128xf32>
      %149 = arith.maximumf %146, %148 : vector<8x128xf32>
      %cst_52 = arith.constant 1.000000e+00 : f32
      %150 = vector.broadcast %cst_52 : f32 to vector<8x128xf32>
      %151 = arith.divf %150, %149 : vector<8x128xf32>
      %cst_53 = arith.constant 0.000000e+00 : f32
      %152 = vector.broadcast %cst_53 : f32 to vector<8x128xf32>
      %153 = arith.cmpf oeq, %146, %152 : vector<8x128xf32>
      %154 = arith.extui %153 : vector<8x128xi1> to vector<8x128xi32>
      %155 = arith.sitofp %154 : vector<8x128xi32> to vector<8x128xf32>
      %cst_54 = arith.constant dense<0xFF800000> : vector<8xf32>
      %156 = vector.multi_reduction <maximumf>, %155, %cst_54 [1] : vector<8x128xf32> to vector<8xf32>
      %157 = vector.shape_cast %156 : vector<8xf32> to vector<8x1xf32>
      %cst_55 = arith.constant 0.000000e+00 : f32
      %158 = vector.broadcast %cst_55 : f32 to vector<8x1xf32>
      %159 = arith.cmpf ogt, %157, %158 : vector<8x1xf32>
      %160 = vector.shape_cast %159 : vector<8x1xi1> to vector<8x1xi1>
      %161 = vector.broadcast %160 : vector<8x1xi1> to vector<8x128xi1>
      %162 = arith.select %161, %155, %151 : vector<8x128xi1>, vector<8x128xf32>
      %163 = tpu.iota {dimensions = array<i32: 1>} : vector<8x128xi32>
      %cst_56 = arith.constant 0.000000e+00 : f32
      %164 = vector.broadcast %cst_56 : f32 to vector<8x128xf32>
      %c0_i32_57 = arith.constant 0 : i32
      %165 = vector.broadcast %c0_i32_57 : i32 to vector<8x128xi32>
      %166 = arith.cmpi eq, %27, %165 : vector<8x128xi32>
      %cst_58 = arith.constant 0.000000e+00 : f32
      %167 = vector.broadcast %cst_58 : f32 to vector<8x128xf32>
      %168 = arith.select %166, %162, %167 : vector<8x128xi1>, vector<8x128xf32>
      %cst_59 = arith.constant dense<0.000000e+00> : vector<8xf32>
      %169 = vector.multi_reduction <add>, %168, %cst_59 [1] : vector<8x128xf32> to vector<8xf32>
      %170 = vector.shape_cast %169 : vector<8xf32> to vector<8x1xf32>
      %c0_i32_60 = arith.constant 0 : i32
      %171 = vector.broadcast %c0_i32_60 : i32 to vector<8x128xi32>
      %172 = arith.select %166, %147, %171 : vector<8x128xi1>, vector<8x128xi32>
      %cst_61 = arith.constant dense<0> : vector<8xi32>
      %173 = vector.multi_reduction <add>, %172, %cst_61 [1] : vector<8x128xi32> to vector<8xi32>
      %174 = vector.shape_cast %173 : vector<8xi32> to vector<8x1xi32>
      %175 = vector.broadcast %174 : vector<8x1xi32> to vector<8x128xi32>
      %176 = arith.cmpi eq, %163, %175 : vector<8x128xi32>
      %177 = arith.extui %176 : vector<8x128xi1> to vector<8x128xi32>
      %178 = arith.sitofp %177 : vector<8x128xi32> to vector<8x128xf32>
      %179 = vector.broadcast %170 : vector<8x1xf32> to vector<8x128xf32>
      %180 = arith.mulf %179, %178 : vector<8x128xf32>
      %181 = arith.addf %164, %180 : vector<8x128xf32>
      %c1_i32_62 = arith.constant 1 : i32
      %182 = vector.broadcast %c1_i32_62 : i32 to vector<8x128xi32>
      %183 = arith.cmpi eq, %27, %182 : vector<8x128xi32>
      %cst_63 = arith.constant 0.000000e+00 : f32
      %184 = vector.broadcast %cst_63 : f32 to vector<8x128xf32>
      %185 = arith.select %183, %162, %184 : vector<8x128xi1>, vector<8x128xf32>
      %cst_64 = arith.constant dense<0.000000e+00> : vector<8xf32>
      %186 = vector.multi_reduction <add>, %185, %cst_64 [1] : vector<8x128xf32> to vector<8xf32>
      %187 = vector.shape_cast %186 : vector<8xf32> to vector<8x1xf32>
      %c0_i32_65 = arith.constant 0 : i32
      %188 = vector.broadcast %c0_i32_65 : i32 to vector<8x128xi32>
      %189 = arith.select %183, %147, %188 : vector<8x128xi1>, vector<8x128xi32>
      %cst_66 = arith.constant dense<0> : vector<8xi32>
      %190 = vector.multi_reduction <add>, %189, %cst_66 [1] : vector<8x128xi32> to vector<8xi32>
      %191 = vector.shape_cast %190 : vector<8xi32> to vector<8x1xi32>
      %192 = vector.broadcast %191 : vector<8x1xi32> to vector<8x128xi32>
      %193 = arith.cmpi eq, %163, %192 : vector<8x128xi32>
      %194 = arith.extui %193 : vector<8x128xi1> to vector<8x128xi32>
      %195 = arith.sitofp %194 : vector<8x128xi32> to vector<8x128xf32>
      %196 = vector.broadcast %187 : vector<8x1xf32> to vector<8x128xf32>
      %197 = arith.mulf %196, %195 : vector<8x128xf32>
      %198 = arith.addf %181, %197 : vector<8x128xf32>
      %c2_i32_67 = arith.constant 2 : i32
      %199 = vector.broadcast %c2_i32_67 : i32 to vector<8x128xi32>
      %200 = arith.cmpi eq, %27, %199 : vector<8x128xi32>
      %cst_68 = arith.constant 0.000000e+00 : f32
      %201 = vector.broadcast %cst_68 : f32 to vector<8x128xf32>
      %202 = arith.select %200, %162, %201 : vector<8x128xi1>, vector<8x128xf32>
      %cst_69 = arith.constant dense<0.000000e+00> : vector<8xf32>
      %203 = vector.multi_reduction <add>, %202, %cst_69 [1] : vector<8x128xf32> to vector<8xf32>
      %204 = vector.shape_cast %203 : vector<8xf32> to vector<8x1xf32>
      %c0_i32_70 = arith.constant 0 : i32
      %205 = vector.broadcast %c0_i32_70 : i32 to vector<8x128xi32>
      %206 = arith.select %200, %147, %205 : vector<8x128xi1>, vector<8x128xi32>
      %cst_71 = arith.constant dense<0> : vector<8xi32>
      %207 = vector.multi_reduction <add>, %206, %cst_71 [1] : vector<8x128xi32> to vector<8xi32>
      %208 = vector.shape_cast %207 : vector<8xi32> to vector<8x1xi32>
      %209 = vector.broadcast %208 : vector<8x1xi32> to vector<8x128xi32>
      %210 = arith.cmpi eq, %163, %209 : vector<8x128xi32>
      %211 = arith.extui %210 : vector<8x128xi1> to vector<8x128xi32>
      %212 = arith.sitofp %211 : vector<8x128xi32> to vector<8x128xf32>
      %213 = vector.broadcast %204 : vector<8x1xf32> to vector<8x128xf32>
      %214 = arith.mulf %213, %212 : vector<8x128xf32>
      %215 = arith.addf %198, %214 : vector<8x128xf32>
      %c3_i32_72 = arith.constant 3 : i32
      %216 = vector.broadcast %c3_i32_72 : i32 to vector<8x128xi32>
      %217 = arith.cmpi eq, %27, %216 : vector<8x128xi32>
      %cst_73 = arith.constant 0.000000e+00 : f32
      %218 = vector.broadcast %cst_73 : f32 to vector<8x128xf32>
      %219 = arith.select %217, %162, %218 : vector<8x128xi1>, vector<8x128xf32>
      %cst_74 = arith.constant dense<0.000000e+00> : vector<8xf32>
      %220 = vector.multi_reduction <add>, %219, %cst_74 [1] : vector<8x128xf32> to vector<8xf32>
      %221 = vector.shape_cast %220 : vector<8xf32> to vector<8x1xf32>
      %c0_i32_75 = arith.constant 0 : i32
      %222 = vector.broadcast %c0_i32_75 : i32 to vector<8x128xi32>
      %223 = arith.select %217, %147, %222 : vector<8x128xi1>, vector<8x128xi32>
      %cst_76 = arith.constant dense<0> : vector<8xi32>
      %224 = vector.multi_reduction <add>, %223, %cst_76 [1] : vector<8x128xi32> to vector<8xi32>
      %225 = vector.shape_cast %224 : vector<8xi32> to vector<8x1xi32>
      %226 = vector.broadcast %225 : vector<8x1xi32> to vector<8x128xi32>
      %227 = arith.cmpi eq, %163, %226 : vector<8x128xi32>
      %228 = arith.extui %227 : vector<8x128xi1> to vector<8x128xi32>
      %229 = arith.sitofp %228 : vector<8x128xi32> to vector<8x128xf32>
      %230 = vector.broadcast %221 : vector<8x1xf32> to vector<8x128xf32>
      %231 = arith.mulf %230, %229 : vector<8x128xf32>
      %232 = arith.addf %215, %231 : vector<8x128xf32>
      %c4_i32_77 = arith.constant 4 : i32
      %233 = vector.broadcast %c4_i32_77 : i32 to vector<8x128xi32>
      %234 = arith.cmpi eq, %27, %233 : vector<8x128xi32>
      %cst_78 = arith.constant 0.000000e+00 : f32
      %235 = vector.broadcast %cst_78 : f32 to vector<8x128xf32>
      %236 = arith.select %234, %162, %235 : vector<8x128xi1>, vector<8x128xf32>
      %cst_79 = arith.constant dense<0.000000e+00> : vector<8xf32>
      %237 = vector.multi_reduction <add>, %236, %cst_79 [1] : vector<8x128xf32> to vector<8xf32>
      %238 = vector.shape_cast %237 : vector<8xf32> to vector<8x1xf32>
      %c0_i32_80 = arith.constant 0 : i32
      %239 = vector.broadcast %c0_i32_80 : i32 to vector<8x128xi32>
      %240 = arith.select %234, %147, %239 : vector<8x128xi1>, vector<8x128xi32>
      %cst_81 = arith.constant dense<0> : vector<8xi32>
      %241 = vector.multi_reduction <add>, %240, %cst_81 [1] : vector<8x128xi32> to vector<8xi32>
      %242 = vector.shape_cast %241 : vector<8xi32> to vector<8x1xi32>
      %243 = vector.broadcast %242 : vector<8x1xi32> to vector<8x128xi32>
      %244 = arith.cmpi eq, %163, %243 : vector<8x128xi32>
      %245 = arith.extui %244 : vector<8x128xi1> to vector<8x128xi32>
      %246 = arith.sitofp %245 : vector<8x128xi32> to vector<8x128xf32>
      %247 = vector.broadcast %238 : vector<8x1xf32> to vector<8x128xf32>
      %248 = arith.mulf %247, %246 : vector<8x128xf32>
      %249 = arith.addf %232, %248 : vector<8x128xf32>
      %cst_82 = arith.constant dense<0xFF800000> : vector<8xf32>
      %250 = vector.multi_reduction <maximumf>, %249, %cst_82 [1] : vector<8x128xf32> to vector<8xf32>
      %251 = vector.shape_cast %250 : vector<8xf32> to vector<8x1xf32>
      %252 = vector.broadcast %251 : vector<8x1xf32> to vector<8x128xf32>
      %253 = arith.cmpf oeq, %249, %252 : vector<8x128xf32>
      %c128_i32_83 = arith.constant 128 : i32
      %254 = vector.broadcast %c128_i32_83 : i32 to vector<8x128xi32>
      %255 = arith.select %253, %163, %254 : vector<8x128xi1>, vector<8x128xi32>
      %cst_84 = arith.constant dense<2147483647> : vector<8xi32>
      %256 = vector.multi_reduction <minsi>, %255, %cst_84 [1] : vector<8x128xi32> to vector<8xi32>
      %257 = vector.shape_cast %256 : vector<8xi32> to vector<8x1xi32>
      %258 = vector.broadcast %257 : vector<8x1xi32> to vector<8x128xi32>
      %259 = arith.cmpi eq, %163, %258 : vector<8x128xi32>
      %260 = arith.extui %259 : vector<8x128xi1> to vector<8x128xi32>
      %261 = arith.sitofp %260 : vector<8x128xi32> to vector<8x128xf32>
      %c0_85 = arith.constant 0 : index
      %c0_86 = arith.constant 0 : index
      %262 = vector.load %arg7[%c0_85, %c0_86] : memref<8x128xf32, #tpu.memory_space<vmem>>, vector<8x128xf32>
      tpu.vector_store %arg7[%c0_85, %c0_86], %261 {strides = array<i32>} : memref<8x128xf32, #tpu.memory_space<vmem>>, vector<8x128xf32>,
    } else {
    }
    return
  }
  func.func @transform_0(%arg0: i32, %arg1: i32) -> (i32, i32) {
    %c0_i32 = arith.constant 0 : i32
    %c0_i32_0 = arith.constant 0 : i32
    return %arg0, %c0_i32 : i32, i32
  }
  func.func @transform_1(%arg0: i32, %arg1: i32) -> (i32, i32) {
    %c0_i32 = arith.constant 0 : i32
    %c0_i32_0 = arith.constant 0 : i32
    return %arg0, %c0_i32 : i32, i32
  }
  func.func @transform_2(%arg0: i32, %arg1: i32) -> (i32, i32) {
    %c0_i32 = arith.constant 0 : i32
    %c0_i32_0 = arith.constant 0 : i32
    return %arg1, %c0_i32 : i32, i32
  }
  func.func @transform_3(%arg0: i32, %arg1: i32) -> (i32, i32) {
    %c0_i32 = arith.constant 0 : i32
    %c0_i32_0 = arith.constant 0 : i32
    return %c0_i32, %arg1 : i32, i32
  }
  func.func @transform_4(%arg0: i32, %arg1: i32) -> (i32, i32) {
    %c0_i32 = arith.constant 0 : i32
    %c0_i32_0 = arith.constant 0 : i32
    return %c0_i32, %arg1 : i32, i32
  }
  func.func @transform_5(%arg0: i32, %arg1: i32) -> (i32, i32) {
    %c0_i32 = arith.constant 0 : i32
    %c0_i32_0 = arith.constant 0 : i32
    return %arg0, %c0_i32 : i32, i32
  }
}

</mosaic_0001>

<bundles_post_ra>
// kernel: tpu_custom_call.1
= control target key start
LH: loop header
LB: loop body
LE: loop exit
PB: predicated region body
PF: predicated region fallthrough
CT: control target
= control target key end

     0   :  { %vm44_vm0 = vcmask 261120   ;;  %v668_v2 = vmov 0.0|0.0   ;;  %vm669_vm2 = vmmov 0   ;;  %v670_v5 = vmov 0.0   ;;  %s890_s0 = inlined_call_operand.vmem [shape: f32[8,32], index: 0, kind: input, shape index: {}]   ;;  %s891_s1 = inlined_call_operand.vmem [shape: f32[8,1], index: 1, kind: input, shape index: {}]   ;;  %s892_s2 = inlined_call_operand.vmem [shape: f32[128,32], index: 2, kind: input, shape index: {}]   ;;  %s893_s3 = inlined_call_operand.vmem [shape: f32[1,128], index: 3, kind: input, shape index: {}]   ;;  %s894_s4 = inlined_call_operand.vmem [shape: s32[1,128], index: 4, kind: input, shape index: {}]   ;;  %s895_s5 = inlined_call_operand.hbm [shape: f32[8,128], index: 5, kind: output, shape index: {}]  }
   0x1   :  { %v28_v0 = vld [vmem:[%s892_s2] sm:$0xff]  ;;  %v29_v1 = vld [vmem:[%s892_s2 + $0x8] sm:$0xff]  ;;  %602 = vmatprep.subr.bf16.mxu0 %v668_v2  ;;  %vm711_vm1 = vmpackc.low %vm44_vm0, %vm44_vm0  ;;  %599 = vmatprep.mubr.msk.f32.mxu0 %vm669_vm2, %v670_v5  ;;  %v671_v6 = vmov 0  }
   0x2   :  { %v603_v3 = vpack.c.bf16 %v29_v1, %v28_v0  ;;  %639 = vset.pattern.permute.xlu0 %v671_v6  ;;  %v30_v7 = vld [vmem:[%s892_s2 + $0x10] sm:$0xff]  ;;  %v31_v8 = vld [vmem:[%s892_s2 + $0x18] sm:$0xff]  ;;  %v166_v9 = vld [vmem:[%s891_s1] sm:$0xff] }
   0x4   :  { %605 = vmatpush3.bf16.xpose.msk.msra.mxu0 %vm711_vm1, %v603_v3 }
   0x5   :  { %606 = vmatprep.subr.bf16.mxu0 %v668_v2 }
   0x6   :  { %10 = vsyncpa [#allocation5], 0  ;;  %v607_v10 = vpack.c.bf16 %v31_v8, %v30_v7  ;;  %170 = vperm.xlu0 %639, %v166_v9   ;;  %v32_v11 = vld [vmem:[%s892_s2 + $0x20] sm:$0xff]  ;;  %v33_v12 = vld [vmem:[%s892_s2 + $0x28] sm:$0xff]  ;;  %v192_v38 = vlaneseq }
   0x7   :  { %v611_v13 = vpack.c.bf16 %v33_v12, %v32_v11  ;;  %v34_v14 = vld [vmem:[%s892_s2 + $0x30] sm:$0xff]  ;;  %v35_v15 = vld [vmem:[%s892_s2 + $0x38] sm:$0xff]  ;;  %v36_v17 = vld [vmem:[%s892_s2 + $0x40] sm:$0xff] }
   0x8   :  { %v615_v16 = vpack.c.bf16 %v35_v15, %v34_v14  ;;  %v37_v18 = vld [vmem:[%s892_s2 + $0x48] sm:$0xff]  ;;  %v38_v20 = vld [vmem:[%s892_s2 + $0x50] sm:$0xff]  ;;  %v39_v21 = vld [vmem:[%s892_s2 + $0x58] sm:$0xff]  ;;  %v784_v39 = vand.u32 127, %v192_v38 }
   0x9   :  { %v619_v19 = vpack.c.bf16 %v37_v18, %v36_v17  ;;  %v623_v22 = vpack.c.bf16 %v39_v21, %v38_v20  ;;  %v40_v23 = vld [vmem:[%s892_s2 + $0x60] sm:$0xff]  ;;  %v41_v24 = vld [vmem:[%s892_s2 + $0x68] sm:$0xff]  ;;  %v42_v26 = vld [vmem:[%s892_s2 + $0x70] sm:$0xff] }
   0xa   :  { %v627_v25 = vpack.c.bf16 %v41_v24, %v40_v23  ;;  %v43_v27 = vld [vmem:[%s892_s2 + $0x78] sm:$0xff]  ;;  %v27_v29 = vld [vmem:[%s890_s0] sm:$0xff]  ;;  %v194_v40 = vadd.s32 128, %v784_v39  ;;  %v791_v43 = vmul.u32 128, %v784_v39  ;;  %vm225_vm12 = vcmp.eq.s32.totalorder %v784_v39, 0 }
   0xb   :  { %v631_v28 = vpack.c.bf16 %v43_v27, %v42_v26  ;;  %v536_v34 = vld [vmem:[%s893_s3] ss:$0 sm:$0xff]  ;;  %vm256_vm14 = vcmp.eq.s32.totalorder %v784_v39, 1  ;;  %s672_s3 = smov [#allocation4]  }
   0xc   :  { %609 = vmatpush3.bf16.xpose.msk.msra.mxu0 %vm711_vm1, %v607_v10  ;;  %v196_v41 = vmul.u32 128, %v194_v40  ;;  %v537_v42 = vld [vmem:[%s894_s4] ss:$0 sm:$0xff]  ;;  %s511_s4 = sshll.u32 %s672_s3, 4  ;;  %s512_s4 = int_to_ptr.vmem [resolvable:$true] %s511_s4 }
   0xd   :  { %610 = vmatprep.subr.bf16.mxu0 %v668_v2  ;;  %s644_s30 = scalar_lea.vmem %s512_s4, 128  ;;  %p649_p1 = scmp.lt.s32.totalorder %s512_s4, %s512_s4 }
   0xe   :  { %v793_v44 = vadd.s32 %v537_v42, %v196_v41  ;;  %p645_p0 = scmp.ne.s32.totalorder %s512_s4, %s644_s30  ;;  %p650_p2 = scmp.lt.s32.totalorder %s644_s30, %s644_s30 }
  0x10   :  { %p651_p3 = por %p650_p2, %p649_p1 }
  0x12   :  { %p652_p4 = pnand %p651_p3, %p645_p0 }
  0x14   :  { %613 = vmatpush3.bf16.xpose.msk.msra.mxu0 %vm711_vm1, %v611_v13 }
  0x15   :  { %614 = vmatprep.subr.bf16.mxu0 %v668_v2 }
  0x1c   :  { %617 = vmatpush3.bf16.xpose.msk.msra.mxu0 %vm711_vm1, %v615_v16 }
  0x1d   :  { %618 = vmatprep.subr.bf16.mxu0 %v668_v2 }
  0x24   :  { %621 = vmatpush3.bf16.xpose.msk.msra.mxu0 %vm711_vm1, %v619_v19 }
  0x25   :  { %622 = vmatprep.subr.bf16.mxu0 %v668_v2 }
  0x2c   :  { %625 = vmatpush3.bf16.xpose.msk.msra.mxu0 %vm711_vm1, %v623_v22 }
  0x2d   :  { %626 = vmatprep.subr.bf16.mxu0 %v668_v2 }
  0x34   :  { %629 = vmatpush3.bf16.xpose.msk.msra.mxu0 %vm711_vm1, %v627_v25 }
  0x35   :  { %630 = vmatprep.subr.bf16.mxu0 %v668_v2 }
  0x3c   :  { %633 = vmatpush3.bf16.xpose.msk.msra.mxu0 %vm711_vm1, %v631_v28 }
  0x43   :  { %600 = vmatmul.mubr.msk.f32.vlgmr.msra.gmra.mrb[0].mxu0 %vm44_vm0, %v27_v29 }
  0x85   :  { %v171_v31 = vpop.permute.xlu0 %170 }
 0x116   :  { %v162_v30 = vpop.f32.mrb[0].mxu0 }
 0x117   :  { %v167_v32 = vmul.f32 2.0, %v162_v30  ;;  %v601_v33 = vpop.f32.mrb[1].mxu0 }
 0x119   :  { %v173_v35 = vsub.f32 %v171_v31, %v167_v32 }
 0x11b   :  { %v181_v36 = vadd.f32 %v536_v34, %v173_v35 }
 0x11d   :  { %v182_v37 = vmax.f32 %v181_v36, 0.0 }
 0x11f   :  { %202 = vmin.xlane.f32.xlu0 %v182_v37 }
 0x1ac   :  { %v795_v45 = vpop.xlane.xlu0 %202 }
 0x1ad   :  { %vm545_vm3 = vcmp.eq.f32.partialorder %v795_v45, inf  ;;  %vm205_vm4 = vcmp.eq.f32.partialorder %v182_v37, %v795_v45 }
 0x1ae   :  { %v206_v46 = vsel %vm545_vm3, %v791_v43, 2147483647  ;;  %v207_v47 = vsel %vm205_vm4, %v793_v44, 2147483647  ;;  %vm287_vm4 = vcmp.eq.s32.totalorder %v784_v39, 2 }
 0x1af   :  { %vm208_vm5 = vcmp.lt.s32.totalorder %v206_v46, %v207_v47 }
 0x1b0   :  { %v209_v48 = vsel %vm208_vm5, %v206_v46, %v207_v47 }
 0x1b1   :  { %v211_v49 = vshra.s32 %v209_v48, 16  ;;  %v210_v51 = vand.u32 65535, %v209_v48 }
 0x1b3   :  { %v213_v50 = vcvt.s32.f32 %v211_v49  ;;  %v212_v53 = vcvt.s32.f32 %v210_v51 }
 0x1b5   :  { %214 = vmin.xlane.f32.xlu1 %v213_v50 }
 0x242   :  { %v215_v52 = vpop.xlane.xlu1 %214 }
 0x243   :  { %vm216_vm6 = vcmp.eq.f32.partialorder %v213_v50, %v215_v52  ;;  %v221_v55 = vcvt.f32.s32 %v215_v52 }
 0x244   :  { %v217_v54 = vsel %vm216_vm6, %v212_v53, inf }
 0x245   :  { %218 = vmin.xlane.f32.xlu1 %v217_v54  ;;  %v222_v57 = vshll.u32 %v221_v55, 16 }
 0x2d2   :  { %v219_v56 = vpop.xlane.xlu1 %218 }
 0x2d3   :  { %v220_v58 = vcvt.f32.s32 %v219_v56 }
 0x2d5   :  { %v223_v59 = vadd.s32 %v222_v57, %v220_v58  ;;  %v226_v58 = vsel %vm225_vm12, %v795_v45, inf }
 0x2d7   :  { %vm229_vm7 = vcmp.eq.s32.totalorder %v793_v44, %v223_v59  ;;  %v224_v12 = vand.u32 127, %v223_v59 }
 0x2d8   :  { %v231_v60 = vsel %vm229_vm7, inf, %v182_v37 }
 0x2d9   :  { %233 = vmin.xlane.f32.xlu1 %v231_v60  ;;  %v227_v15 = vsel %vm225_vm12, %v224_v12, 0 }
 0x366   :  { %v802_v61 = vpop.xlane.xlu1 %233 }
 0x367   :  { %vm546_vm8 = vcmp.eq.f32.partialorder %v802_v61, inf  ;;  %vm236_vm9 = vcmp.eq.f32.partialorder %v231_v60, %v802_v61  ;;  %v257_v59 = vsel %vm256_vm14, %v802_v61, %v226_v58 }
 0x368   :  { %v237_v62 = vsel %vm546_vm8, %v791_v43, 2147483647  ;;  %v238_v63 = vsel %vm236_vm9, %v793_v44, 2147483647 }
 0x369   :  { %vm239_vm10 = vcmp.lt.s32.totalorder %v237_v62, %v238_v63 }
 0x36a   :  { %v240_v0 = vsel %vm239_vm10, %v237_v62, %v238_v63  ;;  %vm318_vm10 = vcmp.eq.s32.totalorder %v784_v39, 3 }
 0x36b   :  { %v242_v1 = vshra.s32 %v240_v0, 16  ;;  %v241_v3 = vand.u32 65535, %v240_v0 }
 0x36d   :  { %v244_v2 = vcvt.s32.f32 %v242_v1  ;;  %v243_v6 = vcvt.s32.f32 %v241_v3 }
 0x36f   :  { %245 = vmin.xlane.f32.xlu1 %v244_v2 }
 0x3fc   :  { %v246_v4 = vpop.xlane.xlu1 %245 }
 0x3fd   :  { %vm247_vm11 = vcmp.eq.f32.partialorder %v244_v2, %v246_v4  ;;  %v252_v8 = vcvt.f32.s32 %v246_v4 }
 0x3fe   :  { %v248_v7 = vsel %vm247_vm11, %v243_v6, inf  ;;  %vm349_vm11 = vcmp.eq.s32.totalorder %v784_v39, 4 }
 0x3ff   :  { %249 = vmin.xlane.f32.xlu1 %v248_v7  ;;  %v253_v10 = vshll.u32 %v252_v8, 16 }
 0x48c   :  { %v250_v9 = vpop.xlane.xlu1 %249 }
 0x48d   :  { %v251_v11 = vcvt.f32.s32 %v250_v9 }
 0x48f   :  { %v254_v13 = vadd.s32 %v253_v10, %v251_v11 }
 0x491   :  { %v255_v14 = vand.u32 127, %v254_v13  ;;  %vm260_vm13 = vcmp.eq.s32.totalorder %v793_v44, %v254_v13 }
 0x492   :  { %v262_v16 = vsel %vm260_vm13, inf, %v231_v60 }
 0x493   :  { %v258_v17 = vsel %vm256_vm14, %v255_v14, %v227_v15  ;;  %264 = vmin.xlane.f32.xlu1 %v262_v16 }
 0x520   :  { %v265_v18 = vpop.xlane.xlu1 %264 }
 0x521   :  { %vm547_vm15 = vcmp.eq.f32.partialorder %v265_v18, inf  ;;  %vm267_vm0 = vcmp.eq.f32.partialorder %v262_v16, %v265_v18  ;;  %v288_v60 = vsel %vm287_vm4, %v265_v18, %v257_v59 }
 0x522   :  { %v268_v19 = vsel %vm547_vm15, %v791_v43, 2147483647  ;;  %v269_v20 = vsel %vm267_vm0, %v793_v44, 2147483647 }
 0x523   :  { %vm270_vm1 = vcmp.lt.s32.totalorder %v268_v19, %v269_v20 }
 0x524   :  { %v271_v21 = vsel %vm270_vm1, %v268_v19, %v269_v20 }
 0x525   :  { %v273_v22 = vshra.s32 %v271_v21, 16  ;;  %v272_v24 = vand.u32 65535, %v271_v21 }
 0x527   :  { %v275_v23 = vcvt.s32.f32 %v273_v22  ;;  %v274_v26 = vcvt.s32.f32 %v272_v24 }
 0x529   :  { %276 = vmin.xlane.f32.xlu1 %v275_v23 }
 0x5b6   :  { %v277_v25 = vpop.xlane.xlu1 %276 }
 0x5b7   :  { %vm278_vm2 = vcmp.eq.f32.partialorder %v275_v23, %v277_v25  ;;  %v283_v28 = vcvt.f32.s32 %v277_v25 }
 0x5b8   :  { %v279_v27 = vsel %vm278_vm2, %v274_v26, inf }
 0x5b9   :  { %280 = vmin.xlane.f32.xlu1 %v279_v27  ;;  %v284_v30 = vshll.u32 %v283_v28, 16 }
 0x646   :  { %v281_v29 = vpop.xlane.xlu1 %280 }
 0x647   :  { %v282_v31 = vcvt.f32.s32 %v281_v29 }
 0x649   :  { %v285_v32 = vadd.s32 %v284_v30, %v282_v31 }
 0x64b   :  { %v286_v33 = vand.u32 127, %v285_v32  ;;  %vm291_vm3 = vcmp.eq.s32.totalorder %v793_v44, %v285_v32 }
 0x64c   :  { %v293_v34 = vsel %vm291_vm3, inf, %v262_v16 }
 0x64d   :  { %v289_v35 = vsel %vm287_vm4, %v286_v33, %v258_v17  ;;  %295 = vmin.xlane.f32.xlu1 %v293_v34 }
 0x6da   :  { %v296_v36 = vpop.xlane.xlu1 %295 }
 0x6db   :  { %vm548_vm5 = vcmp.eq.f32.partialorder %v296_v36, inf  ;;  %vm298_vm6 = vcmp.eq.f32.partialorder %v293_v34, %v296_v36  ;;  %v319_v62 = vsel %vm318_vm10, %v296_v36, %v288_v60 }
 0x6dc   :  { %v299_v37 = vsel %vm548_vm5, %v791_v43, 2147483647  ;;  %v300_v38 = vsel %vm298_vm6, %v793_v44, 2147483647 }
 0x6dd   :  { %vm301_vm7 = vcmp.lt.s32.totalorder %v299_v37, %v300_v38 }
 0x6de   :  { %v302_v40 = vsel %vm301_vm7, %v299_v37, %v300_v38 }
 0x6df   :  { %v304_v41 = vshra.s32 %v302_v40, 16  ;;  %v303_v46 = vand.u32 65535, %v302_v40 }
 0x6e1   :  { %v306_v42 = vcvt.s32.f32 %v304_v41  ;;  %v305_v48 = vcvt.s32.f32 %v303_v46 }
 0x6e3   :  { %307 = vmin.xlane.f32.xlu0 %v306_v42 }
 0x770   :  { %v308_v47 = vpop.xlane.xlu0 %307 }
 0x771   :  { %vm309_vm8 = vcmp.eq.f32.partialorder %v306_v42, %v308_v47  ;;  %v314_v50 = vcvt.f32.s32 %v308_v47 }
 0x772   :  { %v310_v49 = vsel %vm309_vm8, %v305_v48, inf }
 0x773   :  { %311 = vmin.xlane.f32.xlu1 %v310_v49  ;;  %v315_v52 = vshll.u32 %v314_v50, 16 }
 0x800   :  { %v312_v51 = vpop.xlane.xlu1 %311 }
 0x801   :  { %v313_v53 = vcvt.f32.s32 %v312_v51 }
 0x803   :  { %v316_v54 = vadd.s32 %v315_v52, %v313_v53 }
 0x805   :  { %v317_v55 = vand.u32 127, %v316_v54  ;;  %vm322_vm9 = vcmp.eq.s32.totalorder %v793_v44, %v316_v54 }
 0x806   :  { %v324_v56 = vsel %vm322_vm9, inf, %v293_v34 }
 0x807   :  { %v320_v57 = vsel %vm318_vm10, %v317_v55, %v289_v35  ;;  %326 = vmin.xlane.f32.xlu0 %v324_v56 }
 0x894   :  { %v327_v63 = vpop.xlane.xlu0 %326 }
 0x895   :  { %vm549_vm13 = vcmp.eq.f32.partialorder %v327_v63, inf  ;;  %vm329_vm15 = vcmp.eq.f32.partialorder %v324_v56, %v327_v63  ;;  %v350_v0 = vsel %vm349_vm11, %v327_v63, %v319_v62 }
 0x896   :  { %v330_v45 = vsel %vm549_vm13, %v791_v43, 2147483647  ;;  %v331_v1 = vsel %vm329_vm15, %v793_v44, 2147483647  ;;  %640 = vrsqrt.f32 %v350_v0  ;;  %vm360_vm1 = vcmp.eq.f32.partialorder %v350_v0, inf }
 0x897   :  { %vm332_vm0 = vcmp.lt.s32.totalorder %v330_v45, %v331_v1  ;;  %v363_v7 = vand.u32 2147483648, %v350_v0  ;;  %vm362_vm2 = vcmp.eq.f32.partialorder %v350_v0, 0.0 }
 0x898   :  { %v333_v61 = vsel %vm332_vm0, %v330_v45, %v331_v1 }
 0x899   :  { %v335_v2 = vshra.s32 %v333_v61, 16  ;;  %v334_v43 = vand.u32 65535, %v333_v61 }
 0x89b   :  { %v337_v3 = vcvt.s32.f32 %v335_v2  ;;  %v336_v12 = vcvt.s32.f32 %v334_v43 }
 0x89d   :  { %338 = vmin.xlane.f32.xlu1 %v337_v3 }
 0x8a0   :  { %v641_v4 = vpop.eup %640 }
 0x8a1   :  { %v359_v6 = vmul.f32 %v641_v4, %v350_v0 }
 0x8a3   :  { %v361_v8 = vsel %vm360_vm1, %v350_v0, %v359_v6 }
 0x8a4   :  { %v364_v9 = vsel %vm362_vm2, %v363_v7, %v361_v8 }
 0x8a5   :  { %vm369_vm3 = vcmp.eq.f32.partialorder %v364_v9, 0.0  ;;  %v366_v11 = vmax.f32 %v364_v9, 1e-30 }
 0x8a6   :  { %v538_v10 = vsel %vm369_vm3, 1.0, %v670_v5 }
 0x8a7   :  { %372 = vmax.xlane.f32.xlu1 %v538_v10  ;;  %642 = vrcp.f32 %v366_v11 }
 0x8b1   :  { %v643_v15 = vpop.eup %642 }
 0x92a   :  { %v339_v44 = vpop.xlane.xlu1 %338 }
 0x92b   :  { %vm340_vm5 = vcmp.eq.f32.partialorder %v337_v3, %v339_v44  ;;  %v345_v19 = vcvt.f32.s32 %v339_v44 }
 0x92c   :  { %v341_v13 = vsel %vm340_vm5, %v336_v12, inf }
 0x92d   :  { %342 = vmin.xlane.f32.xlu0 %v341_v13  ;;  %v346_v21 = vshll.u32 %v345_v19, 16 }
 0x934   :  { %v373_v14 = vpop.xlane.xlu1 %372 }
 0x935   :  { %vm374_vm6 = vcmp.gt.f32.partialorder %v373_v14, 0.0 }
 0x936   :  { %v377_v16 = vsel %vm374_vm6, %v538_v10, %v643_v15 }
 0x937   :  { %v378_v17 = vsel %vm225_vm12, %v377_v16, 0.0  ;;  %v399_v18 = vsel %vm256_vm14, %v377_v16, 0.0  ;;  %v441_v55 = vsel %vm318_vm10, %v377_v16, 0.0  ;;  %v420_v56 = vsel %vm287_vm4, %v377_v16, 0.0 }
 0x938   :  { %379 = vadd.xlane.f32.xlu1 %v378_v17  ;;  %400 = vadd.xlane.f32.xlu0 %v399_v18 }
 0x9ba   :  { %v343_v20 = vpop.xlane.xlu0 %342 }
 0x9bb   :  { %v344_v22 = vcvt.f32.s32 %v343_v20 }
 0x9bd   :  { %v347_v23 = vadd.s32 %v346_v21, %v344_v22 }
 0x9bf   :  { %v348_v24 = vand.u32 127, %v347_v23 }
 0x9c1   :  { %v351_v25 = vsel %vm349_vm11, %v348_v24, %v320_v57  ;;  %v462_v57 = vsel %vm349_vm11, %v377_v16, 0.0 }
 0x9c2   :  { %v402_v26 = vsel %vm256_vm14, %v351_v25, 0  ;;  %v381_v27 = vsel %vm225_vm12, %v351_v25, 0  ;;  %v423_v34 = vsel %vm287_vm4, %v351_v25, 0  ;;  %v444_v40 = vsel %vm318_vm10, %v351_v25, 0 }
 0x9c3   :  { %v404_v28 = vshrl.u32 %v402_v26, 16  ;;  %v383_v29 = vshrl.u32 %v381_v27, 16  ;;  %v403_v32 = vand.u32 65535, %v402_v26  ;;  %v382_v33 = vand.u32 65535, %v381_v27 }
 0x9c4   :  { %v424_v37 = vand.u32 65535, %v423_v34  ;;  %v425_v38 = vshrl.u32 %v423_v34, 16  ;;  %v445_v46 = vand.u32 65535, %v444_v40  ;;  %v446_v47 = vshrl.u32 %v444_v40, 16 }
 0x9c5   :  { %v406_v30 = vcvt.s32.f32 %v404_v28  ;;  %v385_v31 = vcvt.s32.f32 %v383_v29  ;;  %v405_v35 = vcvt.s32.f32 %v403_v32  ;;  %v384_v36 = vcvt.s32.f32 %v382_v33  ;;  %v380_v58 = vpop.xlane.xlu1 %379  ;;  %v401_v59 = vpop.xlane.xlu0 %400 }
 0x9c6   :  { %v426_v41 = vcvt.s32.f32 %v424_v37  ;;  %v427_v42 = vcvt.s32.f32 %v425_v38  ;;  %v465_v48 = vsel %vm349_vm11, %v351_v25, 0  ;;  %v447_v49 = vcvt.s32.f32 %v445_v46 }
 0x9c7   :  { %409 = vadd.xlane.f32.xlu1 %v406_v30  ;;  %388 = vadd.xlane.f32.xlu0 %v385_v31  ;;  %v448_v50 = vcvt.s32.f32 %v446_v47  ;;  %v466_v51 = vand.u32 65535, %v465_v48  ;;  %v467_v52 = vshrl.u32 %v465_v48, 16 }
 0x9c9   :  { %v468_v53 = vcvt.s32.f32 %v466_v51  ;;  %v469_v54 = vcvt.s32.f32 %v467_v52 }
 0x9cb   :  { %407 = vadd.xlane.f32.xlu1 %v405_v35  ;;  %386 = vadd.xlane.f32.xlu0 %v384_v36 }
 0x9cf   :  { %428 = vadd.xlane.f32.xlu1 %v426_v41  ;;  %430 = vadd.xlane.f32.xlu0 %v427_v42 }
 0x9d3   :  { %449 = vadd.xlane.f32.xlu1 %v447_v49  ;;  %451 = vadd.xlane.f32.xlu0 %v448_v50 }
 0x9d7   :  { %470 = vadd.xlane.f32.xlu1 %v468_v53  ;;  %472 = vadd.xlane.f32.xlu0 %v469_v54 }
 0x9db   :  { %442 = vadd.xlane.f32.xlu1 %v441_v55  ;;  %421 = vadd.xlane.f32.xlu0 %v420_v56 }
 0x9df   :  { %463 = vadd.xlane.f32.xlu0 %v462_v57 }
 0xa54   :  { %v410_v60 = vpop.xlane.xlu1 %409  ;;  %v389_v62 = vpop.xlane.xlu0 %388 }
 0xa55   :  { %v412_v63 = vcvt.f32.s32 %v410_v60  ;;  %v391_v0 = vcvt.f32.s32 %v389_v62 }
 0xa57   :  { %v413_v61 = vshll.u32 %v412_v63, 16  ;;  %v392_v2 = vshll.u32 %v391_v0, 16 }
 0xa58   :  { %v408_v45 = vpop.xlane.xlu1 %407  ;;  %v387_v1 = vpop.xlane.xlu0 %386 }
 0xa59   :  { %v411_v3 = vcvt.f32.s32 %v408_v45  ;;  %v390_v4 = vcvt.f32.s32 %v387_v1 }
 0xa5b   :  { %v414_v6 = vadd.s32 %v413_v61, %v411_v3  ;;  %v393_v7 = vadd.s32 %v392_v2, %v390_v4 }
 0xa5c   :  { %v429_v8 = vpop.xlane.xlu1 %428  ;;  %v431_v9 = vpop.xlane.xlu0 %430 }
 0xa5d   :  { %v433_v10 = vcvt.f32.s32 %v431_v9  ;;  %vm394_vm12 = vcmp.eq.s32.totalorder %v784_v39, %v393_v7  ;;  %vm415_vm14 = vcmp.eq.s32.totalorder %v784_v39, %v414_v6  ;;  %v432_v43 = vcvt.f32.s32 %v429_v8 }
 0xa5e   :  { %v539_v13 = vsel %vm394_vm12, 1.0, %v670_v5  ;;  %v540_v16 = vsel %vm415_vm14, 1.0, %v670_v5 }
 0xa5f   :  { %v434_v11 = vshll.u32 %v433_v10, 16  ;;  %v397_v21 = vmul.f32 %v539_v13, %v380_v58  ;;  %v418_v24 = vmul.f32 %v540_v16, %v401_v59 }
 0xa60   :  { %v450_v44 = vpop.xlane.xlu1 %449  ;;  %v452_v12 = vpop.xlane.xlu0 %451 }
 0xa61   :  { %v435_v14 = vadd.s32 %v434_v11, %v432_v43  ;;  %v454_v15 = vcvt.f32.s32 %v452_v12  ;;  %v453_v17 = vcvt.f32.s32 %v450_v44  ;;  %v419_v32 = vadd.f32 %v418_v24, %v397_v21 }
 0xa63   :  { %v455_v18 = vshll.u32 %v454_v15, 16  ;;  %vm436_vm4 = vcmp.eq.s32.totalorder %v784_v39, %v435_v14 }
 0xa64   :  { %v471_v19 = vpop.xlane.xlu1 %470  ;;  %v473_v20 = vpop.xlane.xlu0 %472  ;;  %v541_v29 = vsel %vm436_vm4, 1.0, %v670_v5 }
 0xa65   :  { %v456_v22 = vadd.s32 %v455_v18, %v453_v17  ;;  %v475_v23 = vcvt.f32.s32 %v473_v20  ;;  %v474_v25 = vcvt.f32.s32 %v471_v19 }
 0xa67   :  { %v476_v26 = vshll.u32 %v475_v23, 16  ;;  %vm457_vm7 = vcmp.eq.s32.totalorder %v784_v39, %v456_v22 }
 0xa68   :  { %v443_v27 = vpop.xlane.xlu1 %442  ;;  %v542_v28 = vsel %vm457_vm7, 1.0, %v670_v5  ;;  %v422_v30 = vpop.xlane.xlu0 %421 }
 0xa69   :  { %v477_v31 = vadd.s32 %v476_v26, %v474_v25  ;;  %v439_v33 = vmul.f32 %v541_v29, %v422_v30  ;;  %v460_v34 = vmul.f32 %v542_v28, %v443_v27 }
 0xa6b   :  { %v440_v35 = vadd.f32 %v439_v33, %v419_v32  ;;  %vm478_vm8 = vcmp.eq.s32.totalorder %v784_v39, %v477_v31 }
 0xa6c   :  { %v543_v36 = vsel %vm478_vm8, 1.0, %v670_v5  ;;  %v464_v37 = vpop.xlane.xlu0 %463 }
 0xa6d   :  { %v481_v38 = vmul.f32 %v543_v36, %v464_v37  ;;  %v461_v40 = vadd.f32 %v460_v34, %v440_v35 }
 0xa6f   :  { %v482_v41 = vadd.f32 %v481_v38, %v461_v40 }
 0xa71   :  { %483 = vmax.xlane.f32.xlu1 %v482_v41 }
 0xafe   :  { %v484_v42 = vpop.xlane.xlu1 %483 }
 0xaff   :  { %vm485_vm9 = vcmp.eq.f32.partialorder %v482_v41, %v484_v42 }
 0xb00   :  { %v486_v46 = vsel %vm485_vm9, %v784_v39, 128 }
 0xb01   :  { %v488_v47 = vshra.s32 %v486_v46, 16  ;;  %v487_v49 = vand.u32 65535, %v486_v46 }
 0xb03   :  { %v490_v48 = vcvt.s32.f32 %v488_v47  ;;  %v489_v51 = vcvt.s32.f32 %v487_v49 }
 0xb05   :  { %491 = vmin.xlane.f32.xlu0 %v490_v48 }
 0xb92   :  { %v492_v50 = vpop.xlane.xlu0 %491 }
 0xb93   :  { %vm493_vm10 = vcmp.eq.f32.partialorder %v490_v48, %v492_v50  ;;  %v498_v53 = vcvt.f32.s32 %v492_v50 }
 0xb94   :  { %v494_v52 = vsel %vm493_vm10, %v489_v51, inf }
 0xb95   :  { %495 = vmin.xlane.f32.xlu1 %v494_v52  ;;  %v499_v55 = vshll.u32 %v498_v53, 16 }
 0xc22   :  { %v496_v54 = vpop.xlane.xlu1 %495 }
 0xc23   :  { %v497_v56 = vcvt.f32.s32 %v496_v54 }
 0xc25   :  { %v500_v57 = vadd.s32 %v499_v55, %v497_v56 }
 0xc27   :  { %vm501_vm11 = vcmp.eq.s32.totalorder %v784_v39, %v500_v57 }
 0xc28   :  { %v544_v58 = vsel %vm501_vm11, 1.0, %v670_v5 }
 0xc29   :  { %504 = vst [vmem:[#allocation4] sm:$0xff] %v544_v58 }
 0xc2a   :  { %655 = shalt.err (!%p652_p4)
}
 0xc2b   :  { %s656_s7 = scalar_lea.hbm %s895_s5, 128 }
 0xc2c   :  { %p657_p5 = scmp.ne.s32.totalorder %s895_s5, %s656_s7  ;;  %p660_p6 = scmp.lt.u32.totalorder %s656_s7, %s895_s5 }
 0xc2e   :  { %p662_p7 = pnand %p660_p6, %p657_p5 }
 0xc30   :  { %665 = shalt.err (!%p662_p7)
}
 0xc31   :  { %514 = dma.vmem_to_hbm [thread:$0]  %s512_s4, 128, %s895_s5, [#allocation5]  }
 0xc32   :  { %666 = dma.done.wait [#allocation5], 128  }
 0xc33   :  { %667 = vsyncadd [#allocation5], 4294967168 }
 0xc34   :  { %518 = vsyncpa [#allocation5], 1 }

</bundles_post_ra>
